<compile_context>
chip_gen: v7x
topology: tpu7x:2x2x1
jax: 0.10.0
libtpu: 0.0.40
codegen_flags: <defaults>
</compile_context>

<pallas_src>
import math
import functools

import jax
import jax.numpy as jnp
from jax import lax
from jax.experimental import pallas as pl
from jax.experimental.pallas import tpu as pltpu


# ---------------------------------------------------------------------------
# Kernel 1: per-head Q/K/V projection pre-pass.
# grid = (B, seq_tiles, H); weights/biases are VMEM-resident (H, ...) slabs.
# ---------------------------------------------------------------------------
def qkv_proj_kernel(xq_ref, xk_ref, xv_ref,
                    wq_ref, wk_ref, wv_ref,
                    bq_ref, bk_ref, bv_ref,
                    qp_ref, kp_ref, vp_ref):
    h = pl.program_id(2)

    def mm(a, b):
        return lax.dot_general(a, b, (((1,), (0,)), ((), ())),
                               preferred_element_type=jnp.float32)

    xq = xq_ref[0]                       # (TS, D)
    xk = xk_ref[0]                       # (TS, D)
    xv = xv_ref[0]                       # (TS, D)

    # 1/sqrt(d_k) is folded into wq/bq in the wrapper.
    qp_ref[0, 0] = (mm(xq, wq_ref[h]) + bq_ref[h]).astype(qp_ref.dtype)
    kp_ref[0, 0] = (mm(xk, wk_ref[h]) + bk_ref[h]).astype(kp_ref.dtype)
    vp_ref[0, 0] = (mm(xv, wv_ref[h]) + bv_ref[h]).astype(vp_ref.dtype)


# ---------------------------------------------------------------------------
# Kernel 2: attention + fused head-concat / output projection.
# grid = (B, q_tiles, H); head axis is innermost and carries acc_ref.
# ---------------------------------------------------------------------------
def attn_kernel(qp_ref, kp_ref, vp_ref, wo_ref, bo_ref, out_ref, acc_ref,
                *, mm_dtype):
    h = pl.program_id(2)
    last_h = pl.num_programs(2) - 1

    q = qp_ref[0, h]                     # (TQ, d_k) mm_dtype
    k = kp_ref[0, h]                     # (S,  d_k) mm_dtype (resident per batch)
    v = vp_ref[0, h]                     # (S,  d_k) mm_dtype

    # scores = q @ k^T (1/sqrt(d_k) already folded into the q projection).
    scores = lax.dot_general(q, k, (((1,), (1,)), ((), ())),
                             preferred_element_type=jnp.float32)   # (TQ, S)

    # Numerically stable softmax in f32.
    # TODO(synk): on v6e/v7x the exp could run in bf16 for ~2x EUP throughput.
    m = jnp.max(scores, axis=-1, keepdims=True)
    e = jnp.exp(scores - m)                                        # (TQ, S) f32
    s = jnp.sum(e, axis=-1, keepdims=True)

    # Un-normalized PV matmul; normalization folded into the small (TQ, d_k)
    # tile (EUP reciprocal, off the VALU).
    oh = lax.dot_general(e.astype(mm_dtype), v, (((1,), (0,)), ((), ())),
                         preferred_element_type=jnp.float32)       # (TQ, d_k)
    oh = oh * pl.reciprocal(s, approx=True)

    @pl.when(h == 0)
    def _():
        acc_ref[...] = jnp.zeros_like(acc_ref)

    # This head's slice of the output projection (fused "concat").
    acc_ref[...] += lax.dot_general(oh.astype(mm_dtype), wo_ref[h],
                                    (((1,), (0,)), ((), ())),
                                    preferred_element_type=jnp.float32)

    @pl.when(h == last_h)
    def _():
        out_ref[0] = (acc_ref[...] + bo_ref[...]).astype(out_ref.dtype)


# ---------------------------------------------------------------------------
# Wrapper
# ---------------------------------------------------------------------------
def _pick_tile(s, prefer):
    """Largest tile <= prefer that divides s (falls back to the full length)."""
    if s <= prefer:
        return s
    for t in (512, 256, 128, 64, 32, 16, 8):
        if t <= prefer and s % t == 0:
            return t
    return s


def _vmem_limit_bytes():
    # v7x has 64 MiB VMEM per core, v5e/v6e have 128 MiB; leave headroom.
    try:
        cap = int(pltpu.get_tpu_info().vmem_capacity_bytes)
    except Exception:
        return 48 * 1024 * 1024
    return max(32 * 1024 * 1024, min(cap * 3 // 4, 100 * 1024 * 1024))


def multi_head_attention(q, k, v, params, heads, *, tq=None, ts=None,
                         matmul_dtype=jnp.bfloat16):
    """q, k, v: (B, S, D). params: PyTorch-convention weights (W is (out, in))."""
    B, S, D = q.shape
    assert k.shape == (B, S, D) and v.shape == (B, S, D)
    assert D % heads == 0, "d_model must be divisible by heads"
    d_k = D // heads

    mm_dtype = jnp.dtype(matmul_dtype)
    out_dtype = q.dtype
    scale = 1.0 / math.sqrt(d_k)

    if tq is None:
        tq = _pick_tile(S, 256)
    if ts is None:
        ts = _pick_tile(S, 256)
    assert S % tq == 0 and S % ts == 0
    num_q = S // tq
    num_s = S // ts

    # nn.Linear: y = x @ W.T + b.  Pre-transpose to (in, out) and split per
    # head -> (H, D, d_k) slabs (VMEM-resident; one lane-dense slice per head).
    def per_head_in(w):                      # (out=D, in=D) -> (H, D, d_k)
        return jnp.transpose(w.T.reshape(D, heads, d_k), (1, 0, 2))

    wq_h = (per_head_in(params["wq"]) * scale).astype(mm_dtype)     # scale folded
    wk_h = per_head_in(params["wk"]).astype(mm_dtype)
    wv_h = per_head_in(params["wv"]).astype(mm_dtype)
    wo_h = params["wo"].T.reshape(heads, d_k, D).astype(mm_dtype)

    bq_h = (params["bq"].reshape(heads, 1, d_k) * scale).astype(jnp.float32)
    bk_h = params["bk"].reshape(heads, 1, d_k).astype(jnp.float32)
    bv_h = params["bv"].reshape(heads, 1, d_k).astype(jnp.float32)
    bo = params["bo"].reshape(1, D).astype(jnp.float32)

    qin = q.astype(mm_dtype)
    kin = k.astype(mm_dtype)
    vin = v.astype(mm_dtype)

    vmem_limit = _vmem_limit_bytes()
    in_isz = int(qin.dtype.itemsize)
    mm_isz = int(mm_dtype.itemsize)
    out_isz = int(jnp.dtype(out_dtype).itemsize)

    # ------------------------- projection pre-pass -------------------------
    x_spec = pl.BlockSpec((1, ts, D), lambda b, si, h: (b, si, 0))
    w_spec = pl.BlockSpec((heads, D, d_k), lambda b, si, h: (0, 0, 0))   # resident
    b_spec = pl.BlockSpec((heads, 1, d_k), lambda b, si, h: (0, 0, 0))   # resident
    p_out_spec = pl.BlockSpec((1, 1, ts, d_k), lambda b, si, h: (b, h, si, 0))

    proj_cost = pl.CostEstimate(
        flops=int(6 * B * S * D * D),
        transcendentals=0,
        bytes_accessed=int(3 * B * S * D * (in_isz + mm_isz) + 3 * D * D * mm_isz),
    )

    qp, kp, vp = pl.pallas_call(
        qkv_proj_kernel,
        out_shape=[jax.ShapeDtypeStruct((B, heads, S, d_k), mm_dtype)] * 3,
        grid_spec=pltpu.PrefetchScalarGridSpec(
            num_scalar_prefetch=0,
            grid=(B, num_s, heads),
            in_specs=[x_spec, x_spec, x_spec,
                      w_spec, w_spec, w_spec,
                      b_spec, b_spec, b_spec],
            out_specs=[p_out_spec, p_out_spec, p_out_spec],
        ),
        compiler_params=pltpu.CompilerParams(
            dimension_semantics=("parallel", "parallel", "parallel"),
            vmem_limit_bytes=vmem_limit,
        ),
        cost_estimate=proj_cost,
    )(qin, kin, vin, wq_h, wk_h, wv_h, bq_h, bk_h, bv_h)

    # --------------------- attention + output projection --------------------
    qp_spec = pl.BlockSpec((1, heads, tq, d_k), lambda b, qi, h: (b, 0, qi, 0))
    kv_spec = pl.BlockSpec((1, heads, S, d_k), lambda b, qi, h: (b, 0, 0, 0))
    wo_spec = pl.BlockSpec((heads, d_k, D), lambda b, qi, h: (0, 0, 0))   # resident
    bo_spec = pl.BlockSpec((1, D), lambda b, qi, h: (0, 0))               # resident
    out_spec = pl.BlockSpec((1, tq, D), lambda b, qi, h: (b, qi, 0))

    attn_cost = pl.CostEstimate(
        flops=int(4 * B * S * S * D + 2 * B * S * D * D),
        transcendentals=int(B * heads * S * S),
        bytes_accessed=int(3 * B * S * D * mm_isz + D * D * mm_isz
                           + B * S * D * out_isz),
    )

    kernel = functools.partial(attn_kernel, mm_dtype=mm_dtype)

    return pl.pallas_call(
        kernel,
        out_shape=jax.ShapeDtypeStruct((B, S, D), out_dtype),
        grid_spec=pltpu.PrefetchScalarGridSpec(
            num_scalar_prefetch=0,
            grid=(B, num_q, heads),
            in_specs=[qp_spec, kv_spec, kv_spec, wo_spec, bo_spec],
            out_specs=out_spec,
            scratch_shapes=[pltpu.VMEM((tq, D), jnp.float32)],
        ),
        compiler_params=pltpu.CompilerParams(
            dimension_semantics=("parallel", "parallel", "arbitrary"),
            vmem_limit_bytes=vmem_limit,
        ),
        cost_estimate=attn_cost,
    )(qp, kp, vp, wo_h, bo)


def reference_mha(q, k, v, params, heads):
    """Pure-JAX reference mirroring the PyTorch module (eval mode, mask=None)."""
    B, S, D = q.shape
    d_k = D // heads

    def lin(x, w, b):
        return x @ w.T + b

    qp = lin(q, params["wq"], params["bq"]).reshape(B, S, heads, d_k).transpose(0, 2, 1, 3)
    kp = lin(k, params["wk"], params["bk"]).reshape(B, S, heads, d_k).transpose(0, 2, 1, 3)
    vp = lin(v, params["wv"], params["bv"]).reshape(B, S, heads, d_k).transpose(0, 2, 1, 3)

    scores = jnp.einsum("bhqd,bhkd->bhqk", qp, kp) / math.sqrt(d_k)
    p = jax.nn.softmax(scores, axis=-1)
    o = jnp.einsum("bhqk,bhkd->bhqd", p, vp)
    concat = o.transpose(0, 2, 1, 3).reshape(B, S, D)
    return lin(concat, params["wo"], params["bo"])


if __name__ == "__main__":
    B, S, D, H = 2, 8, 32, 4

    key = jax.random.PRNGKey(0)
    keys = jax.random.split(key, 11)

    # Deterministic parameter init (PyTorch nn.Linear convention: W is (out, in)).
    bound = 1.0 / math.sqrt(D)
    params = {
        "wq": jax.random.uniform(keys[0], (D, D), jnp.float32, -bound, bound),
        "bq": jax.random.uniform(keys[1], (D,), jnp.float32, -bound, bound),
        "wk": jax.random.uniform(keys[2], (D, D), jnp.float32, -bound, bound),
        "bk": jax.random.uniform(keys[3], (D,), jnp.float32, -bound, bound),
        "wv": jax.random.uniform(keys[4], (D, D), jnp.float32, -bound, bound),
        "bv": jax.random.uniform(keys[5], (D,), jnp.float32, -bound, bound),
        "wo": jax.random.uniform(keys[6], (D, D), jnp.float32, -bound, bound),
        "bo": jax.random.uniform(keys[7], (D,), jnp.float32, -bound, bound),
    }

    q = jax.random.normal(keys[8], (B, S, D), jnp.float32)
    k = jax.random.normal(keys[9], (B, S, D), jnp.float32)
    v = jax.random.normal(keys[10], (B, S, D), jnp.float32)

    ref = reference_mha(q, k, v, params, heads=H)

    # Default path: bf16 matmul operands (MXU-native on v5e/v6e/v7x),
    # f32 softmax / accumulation / output.
    out = multi_head_attention(q, k, v, params, heads=H)
    out = jax.block_until_ready(out)
    assert out.shape == (B, S, D)
    assert jnp.allclose(out, ref, atol=5e-2, rtol=5e-2), "bf16 mismatch vs reference"

    # f32 matmul-operand path (same kernels; casts become no-ops).
    out_f32 = multi_head_attention(q, k, v, params, heads=H,
                                   matmul_dtype=jnp.float32)
    out_f32 = jax.block_until_ready(out_f32)
    assert jnp.allclose(out_f32, ref, atol=5e-2, rtol=5e-2), "f32 mismatch vs reference"

    print("KERNEL_OK")
</pallas_src>

<mosaic_0001>
module attributes {stable_mosaic.version = 11 : i64} {
  func.func @qkv_proj_kernel(%arg0: i32, %arg1: i32, %arg2: i32, %arg3: memref<1x8x32xbf16, #tpu.memory_space<vmem>>, %arg4: memref<1x8x32xbf16, #tpu.memory_space<vmem>>, %arg5: memref<1x8x32xbf16, #tpu.memory_space<vmem>>, %arg6: memref<4x32x8xbf16, #tpu.memory_space<vmem>>, %arg7: memref<4x32x8xbf16, #tpu.memory_space<vmem>>, %arg8: memref<4x32x8xbf16, #tpu.memory_space<vmem>>, %arg9: memref<4x1x8xf32, #tpu.memory_space<vmem>>, %arg10: memref<4x1x8xf32, #tpu.memory_space<vmem>>, %arg11: memref<4x1x8xf32, #tpu.memory_space<vmem>>, %arg12: memref<1x1x8x8xbf16, #tpu.memory_space<vmem>>, %arg13: memref<1x1x8x8xbf16, #tpu.memory_space<vmem>>, %arg14: memref<1x1x8x8xbf16, #tpu.memory_space<vmem>>) attributes {dimension_semantics = [#tpu.dimension_semantics<parallel>, #tpu.dimension_semantics<parallel>, #tpu.dimension_semantics<parallel>], iteration_bounds = array<i64: 2, 1, 4>, scalar_prefetch = 0 : i64, scratch_operands = 0 : i64, tpu.core_type = #tpu.core_type<tc>, window_params = [{transform_indices = @transform_0, window_bounds = array<i64: 1, 8, 32>}, {transform_indices = @transform_1, window_bounds = array<i64: 1, 8, 32>}, {transform_indices = @transform_2, window_bounds = array<i64: 1, 8, 32>}, {pipeline_mode = #tpu.pipeline_mode<synchronous>, transform_indices = @transform_3, window_bounds = array<i64: 4, 32, 8>}, {pipeline_mode = #tpu.pipeline_mode<synchronous>, transform_indices = @transform_4, window_bounds = array<i64: 4, 32, 8>}, {pipeline_mode = #tpu.pipeline_mode<synchronous>, transform_indices = @transform_5, window_bounds = array<i64: 4, 32, 8>}, {pipeline_mode = #tpu.pipeline_mode<synchronous>, transform_indices = @transform_6, window_bounds = array<i64: 4, 1, 8>}, {pipeline_mode = #tpu.pipeline_mode<synchronous>, transform_indices = @transform_7, window_bounds = array<i64: 4, 1, 8>}, {pipeline_mode = #tpu.pipeline_mode<synchronous>, transform_indices = @transform_8, window_bounds = array<i64: 4, 1, 8>}, {transform_indices = @transform_9, window_bounds = array<i64: 1, 1, 8, 8>}, {transform_indices = @transform_10, window_bounds = array<i64: 1, 1, 8, 8>}, {transform_indices = @transform_11, window_bounds = array<i64: 1, 1, 8, 8>}]} {
    %c0 = arith.constant 0 : index
    %c0_0 = arith.constant 0 : index
    %c0_1 = arith.constant 0 : index
    %0 = vector.load %arg3[%c0, %c0_0, %c0_1] : memref<1x8x32xbf16, #tpu.memory_space<vmem>>, vector<1x8x32xbf16>
    %1 = vector.shape_cast %0 : vector<1x8x32xbf16> to vector<8x32xbf16>
    %c0_2 = arith.constant 0 : index
    %c0_3 = arith.constant 0 : index
    %c0_4 = arith.constant 0 : index
    %2 = vector.load %arg4[%c0_2, %c0_3, %c0_4] : memref<1x8x32xbf16, #tpu.memory_space<vmem>>, vector<1x8x32xbf16>
    %3 = vector.shape_cast %2 : vector<1x8x32xbf16> to vector<8x32xbf16>
    %c0_5 = arith.constant 0 : index
    %c0_6 = arith.constant 0 : index
    %c0_7 = arith.constant 0 : index
    %4 = vector.load %arg5[%c0_5, %c0_6, %c0_7] : memref<1x8x32xbf16, #tpu.memory_space<vmem>>, vector<1x8x32xbf16>
    %5 = vector.shape_cast %4 : vector<1x8x32xbf16> to vector<8x32xbf16>
    %6 = arith.index_cast %arg2 : i32 to index
    %c0_8 = arith.constant 0 : index
    %c0_9 = arith.constant 0 : index
    %7 = vector.load %arg6[%6, %c0_8, %c0_9] : memref<4x32x8xbf16, #tpu.memory_space<vmem>>, vector<1x32x8xbf16>
    %8 = vector.shape_cast %7 : vector<1x32x8xbf16> to vector<32x8xbf16>
    %cst = arith.constant dense<0.000000e+00> : vector<8x8xf32>
    %9 = tpu.matmul %1, %8, %cst {dimension_numbers = #tpu.dot_dimension_numbers<[1], [0], [0], [1], [0, 0, 1, 1], [], []>} : vector<8x32xbf16>, vector<32x8xbf16>, vector<8x8xf32> -> vector<8x8xf32>
    %10 = arith.index_cast %arg2 : i32 to index
    %c0_10 = arith.constant 0 : index
    %c0_11 = arith.constant 0 : index
    %11 = vector.load %arg9[%10, %c0_10, %c0_11] : memref<4x1x8xf32, #tpu.memory_space<vmem>>, vector<1x1x8xf32>
    %12 = vector.shape_cast %11 : vector<1x1x8xf32> to vector<1x8xf32>
    %13 = vector.broadcast %12 : vector<1x8xf32> to vector<8x8xf32>
    %14 = arith.addf %9, %13 : vector<8x8xf32>
    %15 = arith.truncf %14 : vector<8x8xf32> to vector<8x8xbf16>
    %c0_12 = arith.constant 0 : index
    %c0_13 = arith.constant 0 : index
    %c0_14 = arith.constant 0 : index
    %c0_15 = arith.constant 0 : index
    %16 = vector.load %arg12[%c0_12, %c0_13, %c0_14, %c0_15] : memref<1x1x8x8xbf16, #tpu.memory_space<vmem>>, vector<1x1x8x8xbf16>
    %17 = vector.shape_cast %16 : vector<1x1x8x8xbf16> to vector<8x8xbf16>
    %18 = vector.shape_cast %15 : vector<8x8xbf16> to vector<1x1x8x8xbf16>
    tpu.vector_store %arg12[%c0_12, %c0_13, %c0_14, %c0_15], %18 {strides = array<i32>} : memref<1x1x8x8xbf16, #tpu.memory_space<vmem>>, vector<1x1x8x8xbf16>,
    %19 = arith.index_cast %arg2 : i32 to index
    %c0_16 = arith.constant 0 : index
    %c0_17 = arith.constant 0 : index
    %20 = vector.load %arg7[%19, %c0_16, %c0_17] : memref<4x32x8xbf16, #tpu.memory_space<vmem>>, vector<1x32x8xbf16>
    %21 = vector.shape_cast %20 : vector<1x32x8xbf16> to vector<32x8xbf16>
    %cst_18 = arith.constant dense<0.000000e+00> : vector<8x8xf32>
    %22 = tpu.matmul %3, %21, %cst_18 {dimension_numbers = #tpu.dot_dimension_numbers<[1], [0], [0], [1], [0, 0, 1, 1], [], []>} : vector<8x32xbf16>, vector<32x8xbf16>, vector<8x8xf32> -> vector<8x8xf32>
    %23 = arith.index_cast %arg2 : i32 to index
    %c0_19 = arith.constant 0 : index
    %c0_20 = arith.constant 0 : index
    %24 = vector.load %arg10[%23, %c0_19, %c0_20] : memref<4x1x8xf32, #tpu.memory_space<vmem>>, vector<1x1x8xf32>
    %25 = vector.shape_cast %24 : vector<1x1x8xf32> to vector<1x8xf32>
    %26 = vector.broadcast %25 : vector<1x8xf32> to vector<8x8xf32>
    %27 = arith.addf %22, %26 : vector<8x8xf32>
    %28 = arith.truncf %27 : vector<8x8xf32> to vector<8x8xbf16>
    %c0_21 = arith.constant 0 : index
    %c0_22 = arith.constant 0 : index
    %c0_23 = arith.constant 0 : index
    %c0_24 = arith.constant 0 : index
    %29 = vector.load %arg13[%c0_21, %c0_22, %c0_23, %c0_24] : memref<1x1x8x8xbf16, #tpu.memory_space<vmem>>, vector<1x1x8x8xbf16>
    %30 = vector.shape_cast %29 : vector<1x1x8x8xbf16> to vector<8x8xbf16>
    %31 = vector.shape_cast %28 : vector<8x8xbf16> to vector<1x1x8x8xbf16>
    tpu.vector_store %arg13[%c0_21, %c0_22, %c0_23, %c0_24], %31 {strides = array<i32>} : memref<1x1x8x8xbf16, #tpu.memory_space<vmem>>, vector<1x1x8x8xbf16>,
    %32 = arith.index_cast %arg2 : i32 to index
    %c0_25 = arith.constant 0 : index
    %c0_26 = arith.constant 0 : index
    %33 = vector.load %arg8[%32, %c0_25, %c0_26] : memref<4x32x8xbf16, #tpu.memory_space<vmem>>, vector<1x32x8xbf16>
    %34 = vector.shape_cast %33 : vector<1x32x8xbf16> to vector<32x8xbf16>
    %cst_27 = arith.constant dense<0.000000e+00> : vector<8x8xf32>
    %35 = tpu.matmul %5, %34, %cst_27 {dimension_numbers = #tpu.dot_dimension_numbers<[1], [0], [0], [1], [0, 0, 1, 1], [], []>} : vector<8x32xbf16>, vector<32x8xbf16>, vector<8x8xf32> -> vector<8x8xf32>
    %36 = arith.index_cast %arg2 : i32 to index
    %c0_28 = arith.constant 0 : index
    %c0_29 = arith.constant 0 : index
    %37 = vector.load %arg11[%36, %c0_28, %c0_29] : memref<4x1x8xf32, #tpu.memory_space<vmem>>, vector<1x1x8xf32>
    %38 = vector.shape_cast %37 : vector<1x1x8xf32> to vector<1x8xf32>
    %39 = vector.broadcast %38 : vector<1x8xf32> to vector<8x8xf32>
    %40 = arith.addf %35, %39 : vector<8x8xf32>
    %41 = arith.truncf %40 : vector<8x8xf32> to vector<8x8xbf16>
    %c0_30 = arith.constant 0 : index
    %c0_31 = arith.constant 0 : index
    %c0_32 = arith.constant 0 : index
    %c0_33 = arith.constant 0 : index
    %42 = vector.load %arg14[%c0_30, %c0_31, %c0_32, %c0_33] : memref<1x1x8x8xbf16, #tpu.memory_space<vmem>>, vector<1x1x8x8xbf16>
    %43 = vector.shape_cast %42 : vector<1x1x8x8xbf16> to vector<8x8xbf16>
    %44 = vector.shape_cast %41 : vector<8x8xbf16> to vector<1x1x8x8xbf16>
    tpu.vector_store %arg14[%c0_30, %c0_31, %c0_32, %c0_33], %44 {strides = array<i32>} : memref<1x1x8x8xbf16, #tpu.memory_space<vmem>>, vector<1x1x8x8xbf16>,
    return
  }
  func.func @transform_0(%arg0: i32, %arg1: i32, %arg2: i32) -> (i32, i32, i32) {
    %c0_i32 = arith.constant 0 : i32
    %c0_i32_0 = arith.constant 0 : i32
    return %arg0, %arg1, %c0_i32 : i32, i32, i32
  }
  func.func @transform_1(%arg0: i32, %arg1: i32, %arg2: i32) -> (i32, i32, i32) {
    %c0_i32 = arith.constant 0 : i32
    %c0_i32_0 = arith.constant 0 : i32
    return %arg0, %arg1, %c0_i32 : i32, i32, i32
  }
  func.func @transform_2(%arg0: i32, %arg1: i32, %arg2: i32) -> (i32, i32, i32) {
    %c0_i32 = arith.constant 0 : i32
    %c0_i32_0 = arith.constant 0 : i32
    return %arg0, %arg1, %c0_i32 : i32, i32, i32
  }
  func.func @transform_3(%arg0: i32, %arg1: i32, %arg2: i32) -> (i32, i32, i32) {
    %c0_i32 = arith.constant 0 : i32
    %c0_i32_0 = arith.constant 0 : i32
    %c0_i32_1 = arith.constant 0 : i32
    %c0_i32_2 = arith.constant 0 : i32
    return %c0_i32, %c0_i32_0, %c0_i32_1 : i32, i32, i32
  }
  func.func @transform_4(%arg0: i32, %arg1: i32, %arg2: i32) -> (i32, i32, i32) {
    %c0_i32 = arith.constant 0 : i32
    %c0_i32_0 = arith.constant 0 : i32
    %c0_i32_1 = arith.constant 0 : i32
    %c0_i32_2 = arith.constant 0 : i32
    return %c0_i32, %c0_i32_0, %c0_i32_1 : i32, i32, i32
  }
  func.func @transform_5(%arg0: i32, %arg1: i32, %arg2: i32) -> (i32, i32, i32) {
    %c0_i32 = arith.constant 0 : i32
    %c0_i32_0 = arith.constant 0 : i32
    %c0_i32_1 = arith.constant 0 : i32
    %c0_i32_2 = arith.constant 0 : i32
    return %c0_i32, %c0_i32_0, %c0_i32_1 : i32, i32, i32
  }
  func.func @transform_6(%arg0: i32, %arg1: i32, %arg2: i32) -> (i32, i32, i32) {
    %c0_i32 = arith.constant 0 : i32
    %c0_i32_0 = arith.constant 0 : i32
    %c0_i32_1 = arith.constant 0 : i32
    %c0_i32_2 = arith.constant 0 : i32
    return %c0_i32, %c0_i32_0, %c0_i32_1 : i32, i32, i32
  }
  func.func @transform_7(%arg0: i32, %arg1: i32, %arg2: i32) -> (i32, i32, i32) {
    %c0_i32 = arith.constant 0 : i32
    %c0_i32_0 = arith.constant 0 : i32
    %c0_i32_1 = arith.constant 0 : i32
    %c0_i32_2 = arith.constant 0 : i32
    return %c0_i32, %c0_i32_0, %c0_i32_1 : i32, i32, i32
  }
  func.func @transform_8(%arg0: i32, %arg1: i32, %arg2: i32) -> (i32, i32, i32) {
    %c0_i32 = arith.constant 0 : i32
    %c0_i32_0 = arith.constant 0 : i32
    %c0_i32_1 = arith.constant 0 : i32
    %c0_i32_2 = arith.constant 0 : i32
    return %c0_i32, %c0_i32_0, %c0_i32_1 : i32, i32, i32
  }
  func.func @transform_9(%arg0: i32, %arg1: i32, %arg2: i32) -> (i32, i32, i32, i32) {
    %c0_i32 = arith.constant 0 : i32
    %c0_i32_0 = arith.constant 0 : i32
    return %arg0, %arg2, %arg1, %c0_i32 : i32, i32, i32, i32
  }
  func.func @transform_10(%arg0: i32, %arg1: i32, %arg2: i32) -> (i32, i32, i32, i32) {
    %c0_i32 = arith.constant 0 : i32
    %c0_i32_0 = arith.constant 0 : i32
    return %arg0, %arg2, %arg1, %c0_i32 : i32, i32, i32, i32
  }
  func.func @transform_11(%arg0: i32, %arg1: i32, %arg2: i32) -> (i32, i32, i32, i32) {
    %c0_i32 = arith.constant 0 : i32
    %c0_i32_0 = arith.constant 0 : i32
    return %arg0, %arg2, %arg1, %c0_i32 : i32, i32, i32, i32
  }
}

</mosaic_0001>

<bundles_post_ra>
// kernel: tpu_custom_call.1
= control target key start
LH: loop header
LB: loop body
LE: loop exit
PB: predicated region body
PF: predicated region fallthrough
CT: control target
= control target key end

     0   :  { %s1605_s0 = inlined_call_operand.vmem [shape: bf16[2,8,32], index: 0, kind: input, shape index: {}]   ;;  %s1606_s1 = inlined_call_operand.vmem [shape: bf16[2,8,32], index: 1, kind: input, shape index: {}]   ;;  %s1607_s2 = inlined_call_operand.vmem [shape: bf16[2,8,32], index: 2, kind: input, shape index: {}]   ;;  %s1608_s3 = inlined_call_operand.vmem [shape: bf16[4,32,8], index: 3, kind: input, shape index: {}]   ;;  %s1609_s4 = inlined_call_operand.vmem [shape: bf16[4,32,8], index: 4, kind: input, shape index: {}]   ;;  %s1610_s5 = inlined_call_operand.vmem [shape: bf16[4,32,8], index: 5, kind: input, shape index: {}]   ;;  %s1611_s6 = inlined_call_operand.vmem [shape: f32[4,1,8], index: 6, kind: input, shape index: {}]   ;;  %s1612_s7 = inlined_call_operand.vmem [shape: f32[4,1,8], index: 7, kind: input, shape index: {}]   ;;  %s1613_s8 = inlined_call_operand.vmem [shape: f32[4,1,8], index: 8, kind: input, shape index: {}]   ;;  %s1614_s9 = inlined_call_operand.hbm [shape: bf16[2,4,8,8], index: 9, kind: output, shape index: {0}]   ;;  %s1615_s10 = inlined_call_operand.hbm [shape: bf16[2,4,8,8], index: 10, kind: output, shape index: {1}]   ;;  %s1616_s11 = inlined_call_operand.hbm [shape: bf16[2,4,8,8], index: 11, kind: output, shape index: {2}]  }
   0x1   :  { %1624 = sst [smem:[#allocation14_spill]] %s1605_s0 }
   0x2   :  { %1625 = sst [smem:[#allocation15_spill]] %s1606_s1 }
   0x3   :  { %1626 = sst [smem:[#allocation16_spill]] %s1608_s3 }
   0x4   :  { %1627 = sst [smem:[#allocation17_spill]] %s1609_s4 }
   0x5   :  { %17 = vsyncpa [#allocation3], 0 }
   0x6   :  { %19 = vsyncpa [#allocation3 + $0x1], 0 }
   0x7   :  { %20 = vsyncpa [#allocation5], 0 }
   0x8   :  { %22 = vsyncpa [#allocation5 + $0x1], 0  ;;  %s1346_s17 = smov 0   ;;  %s1348_s18 = smov 0  }
   0x9   :  { %s1350_s19 = smov 0   ;;  %s1352_s20 = smov 0  }
   0xa   :  { %s1354_s21 = smov 0   ;;  %s1356_s22 = smov 0  }
   0xb   :  { %s1358_s23 = smov 0   ;;  %s1360_s24 = smov 0  }
   0xc LB: > { %1628 = sst [smem:[#allocation9_spill]] %s1271_s22  ;;  %s1618_s25 = sadd.s32 4294967295, %s1279_s24   ;;  %s1279_s24 = sphi %s1360_s24, %s28_s24   ;;  %s1275_s23 = sphi %s1358_s23, %s1646_s23   ;;  %s1271_s22 = sphi %s1356_s22, %s1645_s22   ;;  %s1267_s21 = sphi %s1354_s21, %s1644_s21   ;;  %s1263_s20 = sphi %s1352_s20, %s1643_s20   ;;  %s1259_s19 = sphi %s1350_s19, %s1649_s19   ;;  %s1255_s18 = sphi %s1348_s18, %s1648_s18   ;;  %s1251_s17 = sphi %s1346_s17, %s1647_s17  }
   0xd   : > { %1629 = sst [smem:[#allocation10_spill]] %s1275_s23  ;;  %s1617_s26 = sadd.s32 4294967294, %s1279_s24  }
   0xe   : > { %s40_s27 = sadd.s32 1, %s1271_s22  ;;  %s47_s28 = sadd.s32 1, %s1275_s23 }
   0xf   : > { %p41_p0 = scmp.ge.s32.totalorder %s40_s27, 4  ;;  %p278_p1 = scmp.ne.s32.totalorder %s1259_s19, %s1255_s18 }
  0x10   : > { %p279_p2 = scmp.eq.s32.totalorder %s1618_s25, 7  ;;  %p284_p5 = scmp.ne.s32.totalorder %s1255_s18, %s1251_s17 }
  0x11   : > { %s1651_s27 = smov (%p41_p0, %s40_s27), 0  ;;  %s1653_s28 = smov (!%p41_p0, %s47_s28), %s1275_s23 }
  0x12   : > { %1630 = sst [smem:[#allocation11_spill]] %s1651_s27  ;;  %s262_s29 = ssub.s32 %s1271_s22, %s1651_s27 }
  0x13   : > { %p1399_p3 = por %p279_p2, %p278_p1  ;;  %p49_p4 = scmp.ge.s32.totalorder %s1653_s28, 2 }
  0x14   : > { %p285_p6 = scmp.eq.s32.totalorder %s1617_s26, 7  ;;  %p966_p7 = scmp.ge.s32.totalorder %s1279_s24, 1 }
  0x15   : > { %s1655_s28 = smov (%p49_p4, %s1653_s28), 0  ;;  %p411_p9 = scmp.lt.s32.totalorder %s1279_s24, 9 }
  0x16   : > { %1632 = sst [smem:[#allocation12_spill]] %s1655_s28  ;;  %p1410_p8 = por %p285_p6, %p284_p5 }
  0x17   : > { %s261_s13 = ssub.s32 %s1275_s23, %s1655_s28  ;;  %s268_s14 = sadd.s32 1, %s1259_s19 }
  0x18   : > { %s263_s15 = sor.u32 %s262_s29, %s261_s13  ;;  %p412_p10 = pnand %p966_p7, %p411_p9 }
  0x19   : > { %p266_p11 = scmp.eq.s32.totalorder %s263_s15, 0  ;;  %s1000_s26 = sshll.u32 (!%p412_p10), %s1263_s20, 4  ;;  %v1281_v0 = vmov (!%p412_p10), 0.0   ;;  %vm1282_vm0 = vmmov (!%p412_p10), 0   ;;  %vm529_vm1 = vcmask (!%p412_p10), 261120   ;;  %vm574_vm2 = vcmask (!%p412_p10), 60416  }
  0x1a   : > { %415 = sbr.rel (%p412_p10) target bundleno = 320 (0x140), region = 56  ;;  %p477_p12 = scmp.lt.s32.totalorder (!%p412_p10), %s1267_s21, 1  ;;  %1012 = vmatprep.subr.bf16.mxu0 (!%p412_p10), %v1281_v0  ;;  %1020 = vmatprep.subr.bf16.mxu1 (!%p412_p10), %v1281_v0 }
  0x1b   : > { %s1419_s16 = scalar_select %p266_p11, %s1259_s19, %s268_s14  }
  0x1c   : > { %s1635_s3 = sld [smem:[#allocation16_spill]] (!%p412_p10)  ;;  %s1636_s4 = sld [smem:[#allocation17_spill]] (!%p412_p10)  ;;  %1016 = vmatprep.mubr.msk.bf16.mxu0 (!%p412_p10), %vm1282_vm0, %v1281_v0  ;;  %1024 = vmatprep.mubr.msk.bf16.mxu1 (!%p412_p10), %vm1282_vm0, %v1281_v0 }
  0x1d   : > { %1634 = sst [smem:[#allocation13_spill]] %s1419_s16  ;;  %s648_s16 = scalar_lea.vmem (!%p412_p10), %s1610_s5, %s1000_s26 }
  0x1e   : > { %s1637_s0 = sld [smem:[#allocation14_spill]] (!%p412_p10)  ;;  %s1638_s1 = sld [smem:[#allocation15_spill]] (!%p412_p10)  ;;  %v1122_v6 = vld [vmem:[%s648_s16] sm:$0xff] (!%p412_p10)   ;;  %v1124_v8 = vld [vmem:[%s648_s16 + $0x8] sm:$0xff] (!%p412_p10)  }
  0x1f   : > { %s509_s27 = scalar_lea.vmem (!%p412_p10), %s1611_s6, %s1263_s20  ;;  %s653_s15 = scalar_lea.vmem (!%p412_p10), %s1613_s8, %s1263_s20 }
  0x20   : > { %v975_v10 = vld [vmem:[%s509_s27] ss:$0 sm:$0xff] (!%p412_p10) }
  0x21   : > { %s478_s14 = scalar_select %p477_p12, %s1267_s21, 1  ;;  %v985_v24 = vld [vmem:[%s653_s15] ss:$0 sm:$0xff] }
  0x22   : > { %s504_s22 = scalar_lea.vmem %s1635_s3, %s1000_s26  ;;  %s577_s13 = scalar_lea.vmem %s1636_s4, %s1000_s26 }
  0x23   : > { %v1119_v1 = vld [vmem:[%s504_s22] sm:$0xff]   ;;  %v1120_v2 = vld [vmem:[%s504_s22 + $0x8] sm:$0xff]   ;;  %s970_s25 = sshll.u32 %s478_s14, 2  ;;  %s460_s26 = sand.u32 1, %s1255_s18  }
  0x24   : > { %1013 = vmatpush3.bf16.msra.mxu0 %v1119_v1  ;;  %v1121_v3 = vld [vmem:[%s577_s13] sm:$0xff]   ;;  %s483_s28 = scalar_lea.vmem %s1637_s0, %s970_s25  ;;  %v1123_v4 = vld [vmem:[%s577_s13 + $0x8] sm:$0xff]   ;;  %s490_s22 = scalar_lea.vmem %s1638_s1, %s970_s25 }
  0x25   : > { %1014 = vmatprep.subr.bf16.mxu0 %v1281_v0  ;;  %1021 = vmatpush3.bf16.msra.mxu1 %v1121_v3  ;;  %v499_v5 = vld [vmem:[%s483_s28] sm:$0xf]  ;;  %s497_s23 = scalar_lea.vmem %s1607_s2, %s970_s25  ;;  %s992_s13 = sshll.u32 %s1267_s21, 2 }
  0x26   : > { %1022 = vmatprep.subr.bf16.mxu1 %v1281_v0  ;;  %v500_v7 = vld [vmem:[%s490_s22] sm:$0xf]  ;;  %s1453_s16 = sshll.u32 %s460_s26, 2  ;;  %s582_s25 = scalar_lea.vmem %s1612_s7, %s1263_s20 }
  0x27   : > { %v501_v9 = vld [vmem:[%s497_s23] sm:$0xf]  ;;  %s741_s22 = sadd.s32 %s1263_s20, %s992_s13  ;;  %s462_s21 = scalar_lea.vmem [#allocation2], %s1453_s16 }
  0x28   : > { %1015 = vmatpush3.bf16.msra.mxu0 %v1120_v2  ;;  %v980_v12 = vld [vmem:[%s582_s25] ss:$0 sm:$0xff]  ;;  %s1460_s3 = sshll.u32 %s741_s22, 6  ;;  %s745_s4 = sshll.u32 %s462_s21, 4  ;;  %s1480_s4 = int_to_ptr.vmem [resolvable:$true] %s745_s4 }
  0x29   : > { %1028 = vmatprep.subr.bf16.mxu0 %v1281_v0  ;;  %1023 = vmatpush3.bf16.msra.mxu1 %v1123_v4  ;;  %s1639_s28 = sadd.s32 4294967295, %s1279_s24   ;;  %s1623_s13 = scalar_lea.vmem [#allocation4], %s1453_s16 }
  0x2a   : > { %s1469_s29 = sand.u32 1, %s1639_s28   ;;  %s761_s27 = sshll.u32 %s1623_s13, 4  ;;  %s1488_s27 = int_to_ptr.vmem [resolvable:$true] %s761_s27 }
  0x2b   : > { %1017 = vmatmul.mubr.msk.bf16.vlgmr.msra.gmra.mrb[0].mxu0 %vm529_vm1, %v499_v5  ;;  %s1478_s20 = scalar_lea.hbm %s1614_s9, %s1460_s3  ;;  %s1486_s28 = scalar_lea.hbm %s1615_s10, %s1460_s3 }
  0x2c   : > { %1029 = vmatpush3.bf16.msra.mxu0 %v1122_v6  ;;  %1032 = vmatprep.mubr.msk.bf16.mxu0 %vm1282_vm0, %v1281_v0  ;;  %s719_s25 = scalar_lea.sflag [#allocation3], %s460_s26  ;;  %s1125_s22 = scalar_lea.vmem %s1480_s4, 64 }
  0x2d   : > { %1030 = vmatprep.subr.bf16.mxu0 %v1281_v0  ;;  %1025 = vmatmul.mubr.msk.bf16.vlgmr.msra.gmra.mrb[0].mxu1 %vm529_vm1, %v500_v7  ;;  %p1126_p13 = scmp.ne.s32.totalorder %s1480_s4, %s1125_s22  ;;  %s1283_s13 = smov [#allocation2]  }
  0x2e   : > { %s1129_s0 = sshll.u32 %s1283_s13, 4  ;;  %s1130_s0 = int_to_ptr.vmem [resolvable:$false] %s1129_s0 }
  0x2f   : > { %p1127_p0 = pnand %p1126_p13, %p1399_p3  ;;  %s1131_s1 = scalar_lea.vmem %s1130_s0, 128 }
  0x30   : > { %1031 = vmatpush3.bf16.msra.mxu0 %v1124_v8  ;;  %p1132_p2 = scmp.lt.s32.totalorder %s1480_s4, %s1130_s0  ;;  %p1133_p4 = scmp.lt.s32.totalorder %s1131_s1, %s1125_s22 }
  0x31   : > { %p1128_p1 = pneg %p1127_p0 }
  0x32   : > { %p1134_p5 = por %p1133_p4, %p1132_p2 }
  0x33   : > { %1033 = vmatmul.mubr.msk.bf16.vlgmr.msra.gmra.mrb[4].mxu0 %vm529_vm1, %v501_v9 }
  0x34   : > { %p1135_p6 = pnand %p1134_p5, %p1128_p1 }
  0xfe   : > { %v567_v11 = vpop.f32.mrb[0].mxu0 }
  0xff   : > { %v568_v13 = vadd.f32 %v975_v10, %v567_v11  ;;  %v1018_v14 = vpop.f32.mrb[1].mxu0 }
 0x100   : > { %v570_v15 = vpop.f32.mrb[2].mxu0  ;;  %v639_v16 = vpop.f32.mrb[0].mxu1 }
 0x101   : > { %v573_v17 = vpack.c.bf16 %v568_v13, %v568_v13  ;;  %v1019_v18 = vpop.f32.mrb[3].mxu0  ;;  %v640_v19 = vadd.f32 %v980_v12, %v639_v16  ;;  %v1026_v20 = vpop.f32.mrb[1].mxu1 }
 0x102   : > { %v642_v21 = vpop.f32.mrb[2].mxu1 }
 0x103   : > { %v645_v22 = vpack.c.bf16 %v640_v19, %v640_v19  ;;  %v1027_v23 = vpop.f32.mrb[3].mxu1  ;;  %575 = vst.msk [vmem:[%s462_s21] sm:$0xf] %vm574_vm2, %v573_v17 }
 0x104   : > { %1138 = shalt.err (!%p1135_p6)
}
 0x105   : > { %s1139_s26 = scalar_lea.hbm %s1478_s20, 64  ;;  %s1143_s13 = scalar_lea.hbm %s1614_s9, 512 }
 0x106   : > { %p1140_p7 = scmp.ne.s32.totalorder %s1478_s20, %s1139_s26  ;;  %p1144_p11 = scmp.lt.u32.totalorder %s1478_s20, %s1614_s9 }
 0x107   : > { %p1145_p12 = scmp.lt.u32.totalorder %s1143_s13, %s1139_s26  ;;  %p1147_p0 = scmp.lt.u32.totalorder %s1139_s26, %s1478_s20 }
 0x108   : > { %p1141_p9 = pnand %p1140_p7, %p1399_p3 }
 0x109   : > { %p1146_p13 = por %p1145_p12, %p1144_p11 }
 0x10a   : > { %p1142_p10 = pneg %p1141_p9 }
 0x10b   : > { %p1148_p1 = por %p1147_p0, %p1146_p13 }
 0x10d   : > { %p1149_p2 = pnand %p1148_p1, %p1142_p10 }
 0x10f   : > { %1152 = shalt.err (!%p1149_p2)
}
 0x110   : > { %1036 = dma.vmem_to_hbm [thread:$0]  (%p1399_p3), %s1480_s4, 64, %s1478_s20, %s719_s25   ;;  %v710_v25 = vpop.f32.mrb[4].mxu0 }
 0x111   : > { %s1640_s1 = scalar_lea.vmem [#allocation4], %s1453_s16  ;;  %s476_s14 = scalar_lea.vmem [#allocation6], %s1453_s16 }
 0x112   : > { %646 = vst.msk [vmem:[%s1640_s1] sm:$0xf] %vm574_vm2, %v645_v22  ;;  %s1520_s22 = sshll.u32 %s476_s14, 4  ;;  %s724_s26 = scalar_lea.sflag [#allocation5], %s1469_s29  ;;  %s778_s22 = int_to_ptr.vmem [resolvable:$true] %s1520_s22 }
 0x113   : > { %s1153_s21 = scalar_lea.vmem %s1488_s27, 64  ;;  %s1284_s15 = smov [#allocation4]  }
 0x114   : > { %p1154_p4 = scmp.ne.s32.totalorder %s1488_s27, %s1153_s21  ;;  %s1157_s13 = sshll.u32 %s1284_s15, 4  ;;  %s1158_s13 = int_to_ptr.vmem [resolvable:$false] %s1157_s13 }
 0x115   : > { %s1159_s23 = scalar_lea.vmem %s1158_s13, 128  ;;  %p1160_p7 = scmp.lt.s32.totalorder %s1488_s27, %s1158_s13 }
 0x116   : > { %p1155_p5 = pnand %p1154_p4, %p1399_p3  ;;  %p1161_p9 = scmp.lt.s32.totalorder %s1159_s23, %s1153_s21 }
 0x118   : > { %p1156_p6 = pneg %p1155_p5  ;;  %p1162_p10 = por %p1161_p9, %p1160_p7 }
 0x11a   : > { %p1163_p11 = pnand %p1162_p10, %p1156_p6 }
 0x11c   : > { %1166 = shalt.err (!%p1163_p11)
}
 0x11d   : > { %s1167_s4 = scalar_lea.hbm %s1486_s28, 64  ;;  %s1171_s0 = scalar_lea.hbm %s1615_s10, 512 }
 0x11e   : > { %p1168_p12 = scmp.ne.s32.totalorder %s1486_s28, %s1167_s4  ;;  %p1172_p1 = scmp.lt.u32.totalorder %s1486_s28, %s1615_s10 }
 0x11f   : > { %p1173_p2 = scmp.lt.u32.totalorder %s1171_s0, %s1167_s4  ;;  %p1175_p5 = scmp.lt.u32.totalorder %s1167_s4, %s1486_s28 }
 0x120   : > { %p1169_p13 = pnand %p1168_p12, %p1399_p3 }
 0x121   : > { %p1174_p4 = por %p1173_p2, %p1172_p1 }
 0x122   : > { %p1170_p0 = pneg %p1169_p13 }
 0x123   : > { %p1176_p6 = por %p1175_p5, %p1174_p4 }
 0x125   : > { %p1177_p7 = pnand %p1176_p6, %p1170_p0 }
 0x127   : > { %1180 = shalt.err (!%p1177_p7)
}
 0x128   : > { %1037 = dma.vmem_to_hbm [thread:$0]  (%p1399_p3), %s1488_s27, 64, %s1486_s28, %s724_s26   ;;  %v711_v26 = vadd.f32 %v985_v24, %v710_v25  ;;  %v1034_v27 = vpop.f32.mrb[5].mxu0 }
 0x129   : > { %v713_v28 = vpop.f32.mrb[6].mxu0  ;;  %s1550_s23 = scalar_lea.hbm %s1616_s11, %s1460_s3  ;;  %s1181_s4 = scalar_lea.vmem %s778_s22, 64 }
 0x12a   : > { %v716_v29 = vpack.c.bf16 %v711_v26, %v711_v26  ;;  %v1035_v30 = vpop.f32.mrb[7].mxu0  ;;  %p1182_p9 = scmp.ne.s32.totalorder %s778_s22, %s1181_s4  ;;  %s1285_s27 = smov [#allocation6]  }
 0x12b   : > { %s1185_s28 = sshll.u32 %s1285_s27, 4  ;;  %s1186_s28 = int_to_ptr.vmem [resolvable:$false] %s1185_s28 }
 0x12c   : > { %717 = vst.msk [vmem:[%s476_s14] sm:$0xf] %vm574_vm2, %v716_v29  ;;  %p1183_p10 = pnand %p1182_p9, %p1399_p3  ;;  %s1187_s20 = scalar_lea.vmem %s1186_s28, 128 }
 0x12d   : > { %p1188_p12 = scmp.lt.s32.totalorder %s778_s22, %s1186_s28  ;;  %p1189_p13 = scmp.lt.s32.totalorder %s1187_s20, %s1181_s4 }
 0x12e   : > { %p1184_p11 = pneg %p1183_p10 }
 0x12f   : > { %p1190_p0 = por %p1189_p13, %p1188_p12 }
 0x131   : > { %p1191_p1 = pnand %p1190_p0, %p1184_p11 }
 0x133   : > { %1194 = shalt.err (!%p1191_p1)
}
 0x134   : > { %s1195_s16 = scalar_lea.hbm %s1550_s23, 64  ;;  %s1199_s25 = scalar_lea.hbm %s1616_s11, 512 }
 0x135   : > { %p1196_p2 = scmp.ne.s32.totalorder %s1550_s23, %s1195_s16  ;;  %p1200_p6 = scmp.lt.u32.totalorder %s1550_s23, %s1616_s11 }
 0x136   : > { %p1201_p7 = scmp.lt.u32.totalorder %s1199_s25, %s1195_s16  ;;  %p1203_p10 = scmp.lt.u32.totalorder %s1195_s16, %s1550_s23 }
 0x137   : > { %p1197_p4 = pnand %p1196_p2, %p1399_p3 }
 0x138   : > { %p1202_p9 = por %p1201_p7, %p1200_p6 }
 0x139   : > { %p1198_p5 = pneg %p1197_p4 }
 0x13a   : > { %p1204_p11 = por %p1203_p10, %p1202_p9 }
 0x13c   : > { %p1205_p12 = pnand %p1204_p11, %p1198_p5 }
 0x13e   : > { %1208 = shalt.err (!%p1205_p12)
}
 0x13f   : > { %1038 = dma.vmem_to_hbm [thread:$0]  (%p1399_p3), %s778_s22, 64, %s1550_s23, %s724_s26  }
 0x140 PF: > { %p1052_p13 = scmp.ge.s32.totalorder %s1279_s24, 2  ;;  %s789_s15 = sand.u32 1, %s1251_s17  }
 0x141   : > { %s790_s21 = scalar_lea.sflag [#allocation3], %s789_s15 }
 0x142   : > { %p1043_p0 = pnand %p1052_p13, %p1410_p8 }
 0x144   : > { %1242 = dma.done.wait (!%p1043_p0), %s790_s21, 64  }
 0x145   : > { %1244 = vsyncadd (!%p1043_p0), %s790_s21, 4294967232  ;;  %s1641_s13 = sadd.s32 4294967294, %s1279_s24  }
 0x146   : > { %s798_s4 = sand.u32 1, %s1641_s13  }
 0x147   : > { %s799_s27 = scalar_lea.sflag [#allocation5], %s798_s4 }
 0x148   : > { %1246 = dma.done.wait (!%p1043_p0), %s799_s27, 128  }
 0x149   : > { %1248 = vsyncadd (!%p1043_p0), %s799_s27, 4294967168  ;;  %s28_s24 = sadd.s32 1, %s1279_s24   ;;  %s1642_s30 = sld [smem:[#allocation13_spill]] }
 0x14a   : > { %p25_p3 = scmp.ge.s32.totalorder %s28_s24, 10   ;;  %s1643_s20 = sld [smem:[#allocation9_spill]] }
 0x14b   : > { %s1644_s21 = sld [smem:[#allocation10_spill]]  ;;  %s1645_s22 = sld [smem:[#allocation11_spill]] }
 0x14c   : > { %s1646_s23 = sld [smem:[#allocation12_spill]]  ;;  %s1647_s17 = smov %s1255_s18 }
 0x14d   : > { %s1648_s18 = smov %s1259_s19  ;;  %27 = sbr.rel (!%p25_p3) target bundleno = 12 (0xc), region = 135 }
 0x14f   : > { %s1649_s19 = smov %s1642_s30 }
 0x154   :  { %813 = vsyncpa [#allocation3], 1 }
 0x155   :  { %815 = vsyncpa [#allocation3 + $0x1], 1 }
 0x156   :  { %816 = vsyncpa [#allocation5], 1 }
 0x157   :  { %818 = vsyncpa [#allocation5 + $0x1], 1 }

</bundles_post_ra>
